<compile_context>
chip_gen: v7x
topology: tpu7x:2x2x1
jax: 0.10.0
libtpu: 0.0.40
codegen_flags: <defaults>
</compile_context>

<pallas_src>
import functools
import math

import jax
import jax.numpy as jnp
from jax.experimental import pallas as pl
from jax.experimental.pallas import tpu as pltpu

LANE = 128  # TPU lane width


def _round_up(x, m):
    return ((x + m - 1) // m) * m


# ----------------------------------------------------------------------------
# One-time (per policy update) weight preparation — hoisted out of the forward.
# ----------------------------------------------------------------------------
def prepare_weights(weights, compute_dtype=jnp.bfloat16):
    """weights: list of torch-layout (out_features, in_features) arrays.

    Returns (in, out)-layout matrices in `compute_dtype`, with every output dim
    zero-padded to a multiple of 128 lanes and each layer's input dim padded to
    match the previous layer's padded output. Layer 0 keeps its input dim
    (state_size) unpadded so the activations never need host-side padding.
    """
    prepared = []
    prev_out_padded = weights[0].shape[1]  # state_size, unpadded
    for w in weights:
        out_f, in_f = w.shape
        wt = jnp.asarray(w).T.astype(compute_dtype)            # (in, out)
        out_p = _round_up(out_f, LANE)
        wt = jnp.pad(wt, ((0, prev_out_padded - in_f), (0, out_p - out_f)))
        prepared.append(wt)
        prev_out_padded = out_p
    return prepared


# ----------------------------------------------------------------------------
# Kernel: whole MLP for one batch tile (weights are VMEM-resident).
# ----------------------------------------------------------------------------
def _sps_kernel(*refs, n_layers, n_valid_actions, compute_dtype):
    x_ref = refs[0]
    w_refs = refs[1:1 + n_layers]
    o_ref = refs[1 + n_layers]

    # Cast inside the kernel (input arrives unpadded f32 straight from HBM).
    h = x_ref[...].astype(compute_dtype)

    # Hidden layers: relu(h @ W)   (dropout p=0 -> identity)
    for w_ref in w_refs[:-1]:
        z = jnp.dot(h, w_ref[...], preferred_element_type=jnp.float32)
        h = jnp.maximum(z, 0.0).astype(compute_dtype)

    # Output layer + softmax over the first n_valid_actions lanes (rest = padding).
    logits = jnp.dot(h, w_refs[-1][...], preferred_element_type=jnp.float32)
    lane = jax.lax.broadcasted_iota(jnp.int32, logits.shape, dimension=1)
    logits = jnp.where(lane < n_valid_actions, logits, -jnp.inf)
    m = jnp.max(logits, axis=1, keepdims=True)
    e = jnp.exp(logits - m)                      # exp(-inf) == 0 on padded lanes
    denom = jnp.sum(e, axis=1, keepdims=True)
    # Exact f32 divide: keeps row sums == 1 to f32 precision (approx reciprocal
    # was not accurate enough for the 1e-3 row-sum check).
    o_ref[...] = (e / denom).astype(o_ref.dtype)


# ----------------------------------------------------------------------------
# Wrapper
# ----------------------------------------------------------------------------
def sps_forward(x, prepared_weights, action_size, *,
                compute_dtype=jnp.bfloat16, batch_tile=1024,
                out_dtype=jnp.float32, trim_output=True):
    """x: (B, state_size) float32 (unpadded).  prepared_weights: prepare_weights() output.

    Returns (B, action_size) probabilities if trim_output else the lane-padded
    (B, A_p) array whose padded lanes are exact zeros.
    """
    B, S = x.shape
    n_layers = len(prepared_weights)
    A_p = prepared_weights[-1].shape[1]

    # Batch tile: big tiles amortize per-step overhead; for moderate batches make
    # at least 2 grid steps so v7x's second TensorCore gets work.
    if B >= batch_tile:
        tm = batch_tile
    elif B >= 32:
        tm = _round_up(pl.cdiv(B, 2), 16)
    else:
        tm = _round_up(B, 8)
    grid = (pl.cdiv(B, tm),)

    # Advisory cost estimate for the XLA scheduler.
    dims = [S] + [int(w.shape[1]) for w in prepared_weights]
    flops = 2 * B * sum(dims[i] * dims[i + 1] for i in range(n_layers))
    bytes_accessed = (int(x.size) * x.dtype.itemsize
                      + sum(int(w.size) * w.dtype.itemsize for w in prepared_weights)
                      + B * A_p * jnp.dtype(out_dtype).itemsize)
    cost = pl.CostEstimate(flops=int(flops), transcendentals=int(B * A_p),
                           bytes_accessed=int(bytes_accessed))

    in_specs = [pl.BlockSpec((tm, S), lambda i: (i, 0))]          # batch-tiled input
    for w in prepared_weights:                                    # weights VMEM-resident
        in_specs.append(pl.BlockSpec(tuple(w.shape), lambda i: (0, 0)))
    out_specs = pl.BlockSpec((tm, A_p), lambda i: (i, 0))

    kernel = functools.partial(_sps_kernel, n_layers=n_layers,
                               n_valid_actions=action_size,
                               compute_dtype=compute_dtype)

    out = pl.pallas_call(
        kernel,
        out_shape=jax.ShapeDtypeStruct((B, A_p), out_dtype),
        grid_spec=pl.GridSpec(grid=grid, in_specs=in_specs, out_specs=out_specs),
        compiler_params=pltpu.CompilerParams(dimension_semantics=("parallel",)),
        cost_estimate=cost,
    )(x, *prepared_weights)

    if trim_output:
        return out[:, :action_size]
    return out


# ----------------------------------------------------------------------------
# Reference / init helpers
# ----------------------------------------------------------------------------
def xavier_normal(key, out_features, in_features, gain):
    # matches torch.nn.init.xavier_normal_(w, gain) for weight of shape (out, in)
    std = gain * math.sqrt(2.0 / (in_features + out_features))
    return std * jax.random.normal(key, (out_features, in_features), dtype=jnp.float32)


def reference_forward(x, weights):
    # pure-JAX f32 reference of the PyTorch forward
    h = x
    for i, w in enumerate(weights):
        z = h @ w.T
        if i == len(weights) - 1:
            z = z - jnp.max(z, axis=1, keepdims=True)
            e = jnp.exp(z)
            h = e / jnp.sum(e, axis=1, keepdims=True)
        else:
            h = jnp.maximum(z, 0.0)  # dropout p=0 -> identity
    return h


# TODO(synk): act() (host-side np.random.choice / argmax on the returned probs) and
# update() (Gaussian weight-noise step) are host/driver-side utilities, not part of
# the forward pass; an in-kernel Gumbel-max sampler would change the output contract.

if __name__ == "__main__":
    # small, module-consistent shapes
    batch = 8
    state_size = 32
    hidden_size = (64, 32)   # args.hidden_size tuple
    action_size = 16
    dims = (state_size,) + hidden_size + (action_size,)

    key = jax.random.PRNGKey(0)
    k_x, k1, k2, k3 = jax.random.split(key, 4)

    x = jax.random.normal(k_x, (batch, state_size), dtype=jnp.float32)

    # deterministic xavier_normal(gain=0.0001) init, torch layout (out, in)
    w1 = xavier_normal(k1, dims[1], dims[0], 0.0001)
    w2 = xavier_normal(k2, dims[2], dims[1], 0.0001)
    w3 = xavier_normal(k3, dims[3], dims[2], 0.0001)

    # --- Test 1: module-consistent init, f32 compute path, tight tolerance ---
    params32 = prepare_weights([w1, w2, w3], compute_dtype=jnp.float32)
    out = sps_forward(x, params32, action_size, compute_dtype=jnp.float32)
    out = jax.block_until_ready(out)
    ref = reference_forward(x, [w1, w2, w3])
    assert out.shape == (batch, action_size)
    assert bool(jnp.allclose(jnp.sum(out, axis=1), 1.0, atol=1e-3))
    assert bool(jnp.allclose(out, ref, atol=1e-5, rtol=1e-5))

    # --- Test 2: bf16 MXU path, ragged batch (2 grid steps, masked tail block),
    #             lane-padded output consumed directly (no trailing slice) ---
    kb = jax.random.split(jax.random.PRNGKey(1), 4)
    batch2 = 200
    x2 = jax.random.normal(kb[0], (batch2, state_size), dtype=jnp.float32)
    w1b = xavier_normal(kb[1], dims[1], dims[0], 1.0)
    w2b = xavier_normal(kb[2], dims[2], dims[1], 1.0)
    w3b = xavier_normal(kb[3], dims[3], dims[2], 1.0)
    params_bf16 = prepare_weights([w1b, w2b, w3b], compute_dtype=jnp.bfloat16)
    out2_padded = sps_forward(x2, params_bf16, action_size,
                              compute_dtype=jnp.bfloat16, trim_output=False)
    out2_padded = jax.block_until_ready(out2_padded)
    assert out2_padded.shape == (batch2, 128)
    # padded lanes are exact zeros, so full-row sums are still 1
    assert bool(jnp.allclose(jnp.sum(out2_padded, axis=1), 1.0, atol=1e-3))
    out2 = out2_padded[:, :action_size]
    ref2 = reference_forward(x2, [w1b, w2b, w3b])
    assert bool(jnp.allclose(out2, ref2, atol=1e-2, rtol=5e-2))

    print("KERNEL_OK")
</pallas_src>

<mosaic_0001>
module attributes {stable_mosaic.version = 11 : i64} {
  func.func @_sps_kernel(%arg0: i32, %arg1: memref<8x32xf32, #tpu.memory_space<vmem>>, %arg2: memref<32x128xf32, #tpu.memory_space<vmem>>, %arg3: memref<128x128xf32, #tpu.memory_space<vmem>>, %arg4: memref<128x128xf32, #tpu.memory_space<vmem>>, %arg5: memref<8x128xf32, #tpu.memory_space<vmem>>) attributes {dimension_semantics = [#tpu.dimension_semantics<parallel>], iteration_bounds = array<i64: 1>, scalar_prefetch = 0 : i64, scratch_operands = 0 : i64, tpu.core_type = #tpu.core_type<tc>, window_params = [{transform_indices = @transform_0, window_bounds = array<i64: 8, 32>}, {pipeline_mode = #tpu.pipeline_mode<synchronous>, transform_indices = @transform_1, window_bounds = array<i64: 32, 128>}, {pipeline_mode = #tpu.pipeline_mode<synchronous>, transform_indices = @transform_2, window_bounds = array<i64: 128, 128>}, {pipeline_mode = #tpu.pipeline_mode<synchronous>, transform_indices = @transform_3, window_bounds = array<i64: 128, 128>}, {transform_indices = @transform_4, window_bounds = array<i64: 8, 128>}]} {
    %c0 = arith.constant 0 : index
    %c0_0 = arith.constant 0 : index
    %0 = vector.load %arg1[%c0, %c0_0] : memref<8x32xf32, #tpu.memory_space<vmem>>, vector<8x32xf32>
    %c0_1 = arith.constant 0 : index
    %c0_2 = arith.constant 0 : index
    %1 = vector.load %arg2[%c0_1, %c0_2] : memref<32x128xf32, #tpu.memory_space<vmem>>, vector<32x128xf32>
    %cst = arith.constant dense<0.000000e+00> : vector<8x128xf32>
    %2 = tpu.matmul %0, %1, %cst {dimension_numbers = #tpu.dot_dimension_numbers<[1], [0], [0], [1], [0, 0, 1, 1], [], []>} : vector<8x32xf32>, vector<32x128xf32>, vector<8x128xf32> -> vector<8x128xf32>
    %cst_3 = arith.constant 0.000000e+00 : f32
    %3 = vector.broadcast %cst_3 : f32 to vector<8x128xf32>
    %4 = arith.maximumf %2, %3 : vector<8x128xf32>
    %c0_4 = arith.constant 0 : index
    %c0_5 = arith.constant 0 : index
    %5 = vector.load %arg3[%c0_4, %c0_5] : memref<128x128xf32, #tpu.memory_space<vmem>>, vector<128x128xf32>
    %cst_6 = arith.constant dense<0.000000e+00> : vector<8x128xf32>
    %6 = tpu.matmul %4, %5, %cst_6 {dimension_numbers = #tpu.dot_dimension_numbers<[1], [0], [0], [1], [0, 0, 1, 1], [], []>} : vector<8x128xf32>, vector<128x128xf32>, vector<8x128xf32> -> vector<8x128xf32>
    %cst_7 = arith.constant 0.000000e+00 : f32
    %7 = vector.broadcast %cst_7 : f32 to vector<8x128xf32>
    %8 = arith.maximumf %6, %7 : vector<8x128xf32>
    %c0_8 = arith.constant 0 : index
    %c0_9 = arith.constant 0 : index
    %9 = vector.load %arg4[%c0_8, %c0_9] : memref<128x128xf32, #tpu.memory_space<vmem>>, vector<128x128xf32>
    %cst_10 = arith.constant dense<0.000000e+00> : vector<8x128xf32>
    %10 = tpu.matmul %8, %9, %cst_10 {dimension_numbers = #tpu.dot_dimension_numbers<[1], [0], [0], [1], [0, 0, 1, 1], [], []>} : vector<8x128xf32>, vector<128x128xf32>, vector<8x128xf32> -> vector<8x128xf32>
    %11 = tpu.iota {dimensions = array<i32: 1>} : vector<8x128xi32>
    %c16_i32 = arith.constant 16 : i32
    %12 = vector.broadcast %c16_i32 : i32 to vector<8x128xi32>
    %13 = arith.cmpi slt, %11, %12 : vector<8x128xi32>
    %cst_11 = arith.constant 0xFF800000 : f32
    %14 = vector.broadcast %cst_11 : f32 to vector<8x128xf32>
    %15 = arith.select %13, %10, %14 : vector<8x128xi1>, vector<8x128xf32>
    %cst_12 = arith.constant dense<0xFF800000> : vector<8xf32>
    %16 = vector.multi_reduction <maximumf>, %15, %cst_12 [1] : vector<8x128xf32> to vector<8xf32>
    %17 = vector.shape_cast %16 : vector<8xf32> to vector<8x1xf32>
    %18 = vector.broadcast %17 : vector<8x1xf32> to vector<8x128xf32>
    %19 = arith.subf %15, %18 : vector<8x128xf32>
    %20 = math.exp %19 : vector<8x128xf32>
    %cst_13 = arith.constant dense<0.000000e+00> : vector<8xf32>
    %21 = vector.multi_reduction <add>, %20, %cst_13 [1] : vector<8x128xf32> to vector<8xf32>
    %22 = vector.shape_cast %21 : vector<8xf32> to vector<8x1xf32>
    %23 = vector.broadcast %22 : vector<8x1xf32> to vector<8x128xf32>
    %24 = arith.divf %20, %23 : vector<8x128xf32>
    %c0_14 = arith.constant 0 : index
    %c0_15 = arith.constant 0 : index
    %25 = vector.load %arg5[%c0_14, %c0_15] : memref<8x128xf32, #tpu.memory_space<vmem>>, vector<8x128xf32>
    tpu.vector_store %arg5[%c0_14, %c0_15], %24 {strides = array<i32>} : memref<8x128xf32, #tpu.memory_space<vmem>>, vector<8x128xf32>,
    return
  }
  func.func @transform_0(%arg0: i32) -> (i32, i32) {
    %c0_i32 = arith.constant 0 : i32
    %c0_i32_0 = arith.constant 0 : i32
    return %arg0, %c0_i32 : i32, i32
  }
  func.func @transform_1(%arg0: i32) -> (i32, i32) {
    %c0_i32 = arith.constant 0 : i32
    %c0_i32_0 = arith.constant 0 : i32
    %c0_i32_1 = arith.constant 0 : i32
    return %c0_i32, %c0_i32_0 : i32, i32
  }
  func.func @transform_2(%arg0: i32) -> (i32, i32) {
    %c0_i32 = arith.constant 0 : i32
    %c0_i32_0 = arith.constant 0 : i32
    %c0_i32_1 = arith.constant 0 : i32
    return %c0_i32, %c0_i32_0 : i32, i32
  }
  func.func @transform_3(%arg0: i32) -> (i32, i32) {
    %c0_i32 = arith.constant 0 : i32
    %c0_i32_0 = arith.constant 0 : i32
    %c0_i32_1 = arith.constant 0 : i32
    return %c0_i32, %c0_i32_0 : i32, i32
  }
  func.func @transform_4(%arg0: i32) -> (i32, i32) {
    %c0_i32 = arith.constant 0 : i32
    %c0_i32_0 = arith.constant 0 : i32
    return %arg0, %c0_i32 : i32, i32
  }
}

</mosaic_0001>

<bundles_post_ra>
// kernel: tpu_custom_call.1
= control target key start
LH: loop header
LB: loop body
LE: loop exit
PB: predicated region body
PF: predicated region fallthrough
CT: control target
= control target key end

     0   :  { %9 = vsyncpa [#allocation3], 0  ;;  %s787_s0 = inlined_call_operand.hbm [shape: f32[8,32], index: 0, kind: input, shape index: {}]   ;;  %s788_s1 = inlined_call_operand.hbm [shape: f32[32,128], index: 1, kind: input, shape index: {}]   ;;  %s789_s2 = inlined_call_operand.hbm [shape: f32[128,128], index: 2, kind: input, shape index: {}]   ;;  %s790_s3 = inlined_call_operand.hbm [shape: f32[128,128], index: 3, kind: input, shape index: {}]   ;;  %s791_s4 = inlined_call_operand.hbm [shape: f32[8,128], index: 4, kind: output, shape index: {}]  }
   0x1   :  { %10 = vsyncpa [#allocation6], 0 }
   0x2   :  { %11 = vsyncpa [#allocation9], 0 }
   0x3   :  { %12 = vsyncpa [#allocation4], 0  ;;  %s662_s15 = smov [#allocation5]   ;;  %s544_s19 = scalar_lea.hbm %s788_s1, 512 }
   0x4   :  { %s28_s16 = sshll.u32 %s662_s15, 4  ;;  %p545_p0 = scmp.ne.s32.totalorder %s788_s1, %s544_s19  ;;  %s29_s16 = int_to_ptr.vmem [resolvable:$true] %s28_s16 }
   0x5   :  { %p548_p1 = scmp.lt.u32.totalorder %s544_s19, %s788_s1 }
   0x7   :  { %p550_p2 = pnand %p548_p1, %p545_p0 }
   0x9   :  { %553 = shalt.err (!%p550_p2)
}
   0xa   :  { %s554_s24 = scalar_lea.vmem %s29_s16, 512  ;;  %p559_p4 = scmp.lt.s32.totalorder %s29_s16, %s29_s16 }
   0xb   :  { %p555_p3 = scmp.ne.s32.totalorder %s29_s16, %s554_s24  ;;  %p560_p5 = scmp.lt.s32.totalorder %s554_s24, %s554_s24 }
   0xd   :  { %p561_p6 = por %p560_p5, %p559_p4 }
   0xf   :  { %p562_p7 = pnand %p561_p6, %p555_p3 }
  0x11   :  { %565 = shalt.err (!%p562_p7)
}
  0x12   :  { %s663_s25 = smov 128   ;;  %s664_s26 = smov 8  }
  0x13   :  { %34 = dma.hbm_to_vmem [thread:$0]  %s788_s1, 512, %s29_s16, [#allocation6], %s663_s25, %s663_s25, %s664_s26  }
  0x14   :  { %s665_s29 = smov [#allocation2]   ;;  %s666_s5 = smov [#allocation7]  }
  0x15   :  { %s19_s30 = sshll.u32 %s665_s29, 4  ;;  %s40_s6 = sshll.u32 %s666_s5, 4  ;;  %s20_s30 = int_to_ptr.vmem [resolvable:$true] %s19_s30  ;;  %s41_s6 = int_to_ptr.vmem [resolvable:$true] %s40_s6 }
  0x16   :  { %s566_s9 = scalar_lea.hbm %s787_s0, 128 }
  0x17   :  { %p567_p8 = scmp.ne.s32.totalorder %s787_s0, %s566_s9  ;;  %p570_p9 = scmp.lt.u32.totalorder %s566_s9, %s787_s0 }
  0x19   :  { %p572_p10 = pnand %p570_p9, %p567_p8 }
  0x1b   :  { %575 = shalt.err (!%p572_p10)
}
  0x1c   :  { %s576_s1 = scalar_lea.vmem %s20_s30, 128  ;;  %p581_p12 = scmp.lt.s32.totalorder %s20_s30, %s20_s30 }
  0x1d   :  { %p577_p11 = scmp.ne.s32.totalorder %s20_s30, %s576_s1  ;;  %p582_p13 = scmp.lt.s32.totalorder %s576_s1, %s576_s1 }
  0x1f   :  { %p583_p0 = por %p582_p13, %p581_p12 }
  0x21   :  { %p584_p1 = pnand %p583_p0, %p577_p11 }
  0x23   :  { %587 = shalt.err (!%p584_p1)
}
  0x24   :  { %22 = dma.hbm_to_vmem [thread:$0]  %s787_s0, 128, %s20_s30, [#allocation3]  }
  0x25   :  { %s588_s18 = scalar_lea.hbm %s789_s2, 2048 }
  0x26   :  { %p589_p2 = scmp.ne.s32.totalorder %s789_s2, %s588_s18  ;;  %p592_p3 = scmp.lt.u32.totalorder %s588_s18, %s789_s2 }
  0x28   :  { %p594_p4 = pnand %p592_p3, %p589_p2 }
  0x2a   :  { %597 = shalt.err (!%p594_p4)
}
  0x2b   :  { %s598_s23 = scalar_lea.vmem %s41_s6, 2048  ;;  %p603_p6 = scmp.lt.s32.totalorder %s41_s6, %s41_s6 }
  0x2c   :  { %p599_p5 = scmp.ne.s32.totalorder %s41_s6, %s598_s23  ;;  %p604_p7 = scmp.lt.s32.totalorder %s598_s23, %s598_s23 }
  0x2e   :  { %p605_p8 = por %p604_p7, %p603_p6 }
  0x30   :  { %p606_p9 = pnand %p605_p8, %p599_p5 }
  0x32   :  { %609 = shalt.err (!%p606_p9)
}
  0x33   :  { %46 = dma.hbm_to_vmem [thread:$0]  %s789_s2, 2048, %s41_s6, [#allocation6], %s663_s25, %s663_s25, %s664_s26  }
  0x34   :  { %s667_s27 = smov [#allocation8]   ;;  %s610_s5 = scalar_lea.hbm %s790_s3, 2048 }
  0x35   :  { %s52_s28 = sshll.u32 %s667_s27, 4  ;;  %p611_p10 = scmp.ne.s32.totalorder %s790_s3, %s610_s5  ;;  %s53_s28 = int_to_ptr.vmem [resolvable:$true] %s52_s28 }
  0x36   :  { %p614_p11 = scmp.lt.u32.totalorder %s610_s5, %s790_s3 }
  0x38   :  { %p616_p12 = pnand %p614_p11, %p611_p10 }
  0x3a   :  { %619 = shalt.err (!%p616_p12)
}
  0x3b   :  { %s620_s11 = scalar_lea.vmem %s53_s28, 2048  ;;  %p625_p0 = scmp.lt.s32.totalorder %s53_s28, %s53_s28 }
  0x3c   :  { %p621_p13 = scmp.ne.s32.totalorder %s53_s28, %s620_s11  ;;  %p626_p1 = scmp.lt.s32.totalorder %s620_s11, %s620_s11 }
  0x3e   :  { %p627_p2 = por %p626_p1, %p625_p0 }
  0x40   :  { %p628_p3 = pnand %p627_p2, %p621_p13 }
  0x42   :  { %631 = shalt.err (!%p628_p3)
}
  0x43   :  { %58 = dma.hbm_to_vmem [thread:$0]  %s790_s3, 2048, %s53_s28, [#allocation9], %s663_s25, %s663_s25, %s664_s26  }
  0x44   :  { %654 = dma.done.wait [#allocation3], 128  }
  0x45   :  { %655 = vsyncadd [#allocation3], 4294967168 }
  0x46   :  { %656 = dma.done.wait [#allocation6], 2560  }
  0x47   :  { %657 = vsyncadd [#allocation6], 4294964736 }
  0x48   :  { %658 = dma.done.wait [#allocation9], 2048  }
  0x49   :  { %659 = vsyncadd [#allocation9], 4294965248  ;;  %v668_v0 = vmov 0.0|0.0   ;;  %vm669_vm0 = vmmov 0   ;;  %v670_v1 = vmov 0.0   ;;  %v72_v2 = vld [vmem:[#allocation5] sm:$0xff]  ;;  %v324_v63 = vlaneseq }
  0x4a   :  { %476 = vmatprep.subr.bf16.mxu0 %v668_v0  ;;  %403 = vmatprep.mubr.msk.f32.mxu0 %vm669_vm0, %v670_v1  ;;  %v73_v3 = vld [vmem:[#allocation5 + $0x8] sm:$0xff]  ;;  %v74_v4 = vld [vmem:[#allocation5 + $0x10] sm:$0xff]  ;;  %v75_v6 = vld [vmem:[#allocation5 + $0x18] sm:$0xff]  ;;  %vm76_vm1 = vcmask 261120   ;;  %s671_s3 = smov [#allocation10]  }
  0x4b   :  { %482 = vmatprep.subr.bf16.mxu1 %v668_v0  ;;  %438 = vmatprep.mubr.msk.f32.mxu1 %vm669_vm0, %v670_v1  ;;  %v477_v5 = vpack.c.bf16 %v73_v3, %v72_v2  ;;  %v151_v7 = vld [vmem:[#allocation7] sm:$0xff]  ;;  %v152_v8 = vld [vmem:[#allocation7 + $0x8] sm:$0xff]  ;;  %v153_v9 = vld [vmem:[#allocation7 + $0x10] sm:$0xff]  ;;  %v480_v11 = vpack.c.bf16 %v75_v6, %v74_v4  ;;  %s344_s25 = sshll.u32 %s671_s3, 4  ;;  %s345_s25 = int_to_ptr.vmem [resolvable:$true] %s344_s25 }
  0x4c   :  { %v154_v10 = vld [vmem:[#allocation7 + $0x18] sm:$0xff]  ;;  %v483_v12 = vpack.c.bf16 %v152_v8, %v151_v7  ;;  %v155_v14 = vld [vmem:[#allocation7 + $0x20] sm:$0xff]  ;;  %v156_v15 = vld [vmem:[#allocation7 + $0x28] sm:$0xff]  ;;  %s632_s26 = scalar_lea.vmem %s345_s25, 128  ;;  %p637_p5 = scmp.lt.s32.totalorder %s345_s25, %s345_s25 }
  0x4d   :  { %478 = vmatpush3.bf16.msra.mxu0 %v477_v5  ;;  %v486_v13 = vpack.c.bf16 %v154_v10, %v153_v9  ;;  %v71_v16 = vld [vmem:[#allocation2] sm:$0xff]  ;;  %v489_v17 = vpack.c.bf16 %v156_v15, %v155_v14  ;;  %v157_v18 = vld [vmem:[#allocation7 + $0x30] sm:$0xff]  ;;  %v159_v21 = vld [vmem:[#allocation7 + $0x40] sm:$0xff]  ;;  %p633_p4 = scmp.ne.s32.totalorder %s345_s25, %s632_s26  ;;  %p638_p6 = scmp.lt.s32.totalorder %s632_s26, %s632_s26 }
  0x4e   :  { %479 = vmatprep.subr.bf16.mxu0 %v668_v0  ;;  %484 = vmatpush3.bf16.msra.mxu1 %v483_v12  ;;  %v158_v19 = vld [vmem:[#allocation7 + $0x38] sm:$0xff]  ;;  %v160_v22 = vld [vmem:[#allocation7 + $0x48] sm:$0xff]  ;;  %v161_v24 = vld [vmem:[#allocation7 + $0x50] sm:$0xff] }
  0x4f   :  { %485 = vmatprep.subr.bf16.mxu1 %v668_v0  ;;  %v492_v20 = vpack.c.bf16 %v158_v19, %v157_v18  ;;  %v495_v23 = vpack.c.bf16 %v160_v22, %v159_v21  ;;  %v162_v25 = vld [vmem:[#allocation7 + $0x58] sm:$0xff]  ;;  %v163_v27 = vld [vmem:[#allocation7 + $0x60] sm:$0xff]  ;;  %v164_v28 = vld [vmem:[#allocation7 + $0x68] sm:$0xff]  ;;  %p639_p7 = por %p638_p6, %p637_p5 }
  0x50   :  { %v498_v26 = vpack.c.bf16 %v162_v25, %v161_v24  ;;  %v501_v29 = vpack.c.bf16 %v164_v28, %v163_v27  ;;  %v165_v30 = vld [vmem:[#allocation7 + $0x70] sm:$0xff]  ;;  %v166_v31 = vld [vmem:[#allocation7 + $0x78] sm:$0xff]  ;;  %v238_v33 = vld [vmem:[#allocation8] sm:$0xff] }
  0x51   :  { %481 = vmatpush3.bf16.msra.mxu0 %v480_v11  ;;  %v504_v32 = vpack.c.bf16 %v166_v31, %v165_v30  ;;  %v239_v34 = vld [vmem:[#allocation8 + $0x8] sm:$0xff]  ;;  %v240_v35 = vld [vmem:[#allocation8 + $0x10] sm:$0xff]  ;;  %v241_v37 = vld [vmem:[#allocation8 + $0x18] sm:$0xff]  ;;  %p640_p8 = pnand %p639_p7, %p633_p4 }
  0x52   :  { %506 = vmatprep.subr.bf16.mxu0 %v668_v0  ;;  %487 = vmatpush3.bf16.msra.mxu1 %v486_v13  ;;  %v507_v36 = vpack.c.bf16 %v239_v34, %v238_v33  ;;  %v510_v38 = vpack.c.bf16 %v241_v37, %v240_v35  ;;  %v242_v39 = vld [vmem:[#allocation8 + $0x20] sm:$0xff]  ;;  %v243_v40 = vld [vmem:[#allocation8 + $0x28] sm:$0xff]  ;;  %v244_v42 = vld [vmem:[#allocation8 + $0x30] sm:$0xff] }
  0x53   :  { %488 = vmatprep.subr.bf16.mxu1 %v668_v0  ;;  %v513_v41 = vpack.c.bf16 %v243_v40, %v242_v39  ;;  %v245_v43 = vld [vmem:[#allocation8 + $0x38] sm:$0xff]  ;;  %v246_v45 = vld [vmem:[#allocation8 + $0x40] sm:$0xff]  ;;  %v247_v46 = vld [vmem:[#allocation8 + $0x48] sm:$0xff] }
  0x54   :  { %404 = vmatmul.mubr.msk.f32.vlgmr.msra.gmra.mrb[0].mxu0 %vm76_vm1, %v71_v16  ;;  %v516_v44 = vpack.c.bf16 %v245_v43, %v244_v42  ;;  %v519_v47 = vpack.c.bf16 %v247_v46, %v246_v45  ;;  %v248_v48 = vld [vmem:[#allocation8 + $0x50] sm:$0xff]  ;;  %v249_v49 = vld [vmem:[#allocation8 + $0x58] sm:$0xff]  ;;  %v250_v51 = vld [vmem:[#allocation8 + $0x60] sm:$0xff] }
  0x55   :  { %473 = vmatprep.mubr.msk.f32.mxu0 %vm669_vm0, %v670_v1  ;;  %508 = vmatpush3.bf16.msra.mxu0 %v507_v36  ;;  %v522_v50 = vpack.c.bf16 %v249_v49, %v248_v48  ;;  %v251_v52 = vld [vmem:[#allocation8 + $0x68] sm:$0xff]  ;;  %v252_v57 = vld [vmem:[#allocation8 + $0x70] sm:$0xff]  ;;  %v253_v58 = vld [vmem:[#allocation8 + $0x78] sm:$0xff]  ;;  %v325_v1 = vand.u32 127, %v324_v63 }
  0x56   :  { %490 = vmatpush3.bf16.msra.mxu1 %v489_v17  ;;  %509 = vmatprep.subr.bf16.mxu0 %v668_v0  ;;  %v525_v53 = vpack.c.bf16 %v251_v52, %v250_v51  ;;  %v528_v59 = vpack.c.bf16 %v253_v58, %v252_v57 }
  0x57   :  { %491 = vmatprep.subr.bf16.mxu1 %v668_v0  ;;  %vm326_vm2 = vcmp.lt.s32.totalorder %v325_v1, 16 }
  0x59   :  { %511 = vmatpush3.bf16.msra.mxu0 %v510_v38 }
  0x5a   :  { %493 = vmatpush3.bf16.msra.mxu1 %v492_v20  ;;  %512 = vmatprep.subr.bf16.mxu0 %v668_v0 }
  0x5b   :  { %494 = vmatprep.subr.bf16.mxu1 %v668_v0 }
  0x5d   :  { %514 = vmatpush3.bf16.msra.mxu0 %v513_v41 }
  0x5e   :  { %496 = vmatpush3.bf16.msra.mxu1 %v495_v23  ;;  %515 = vmatprep.subr.bf16.mxu0 %v668_v0 }
  0x5f   :  { %497 = vmatprep.subr.bf16.mxu1 %v668_v0 }
  0x61   :  { %517 = vmatpush3.bf16.msra.mxu0 %v516_v44 }
  0x62   :  { %499 = vmatpush3.bf16.msra.mxu1 %v498_v26  ;;  %518 = vmatprep.subr.bf16.mxu0 %v668_v0 }
  0x63   :  { %500 = vmatprep.subr.bf16.mxu1 %v668_v0 }
  0x65   :  { %520 = vmatpush3.bf16.msra.mxu0 %v519_v47 }
  0x66   :  { %502 = vmatpush3.bf16.msra.mxu1 %v501_v29  ;;  %521 = vmatprep.subr.bf16.mxu0 %v668_v0 }
  0x67   :  { %503 = vmatprep.subr.bf16.mxu1 %v668_v0 }
  0x69   :  { %523 = vmatpush3.bf16.msra.mxu0 %v522_v50 }
  0x6a   :  { %505 = vmatpush3.bf16.msra.mxu1 %v504_v32  ;;  %524 = vmatprep.subr.bf16.mxu0 %v668_v0 }
  0x6d   :  { %526 = vmatpush3.bf16.msra.mxu0 %v525_v53 }
  0x6e   :  { %527 = vmatprep.subr.bf16.mxu0 %v668_v0 }
  0x71   :  { %529 = vmatpush3.bf16.msra.mxu0 %v528_v59 }
 0x127   :  { %v146_v54 = vpop.f32.mrb[0].mxu0 }
 0x128   :  { %v150_v55 = vmax.f32 %v146_v54, 0.0  ;;  %v405_v56 = vpop.f32.mrb[1].mxu0 }
 0x12a   :  { %439 = vmatmul.mubr.f32.vlgmr.msra.gmra.mrb[0].mxu1 %v150_v55 }
 0x1fd   :  { %v233_v60 = vpop.f32.mrb[0].mxu1 }
 0x1fe   :  { %v237_v61 = vmax.f32 %v233_v60, 0.0  ;;  %v440_v62 = vpop.f32.mrb[1].mxu1 }
 0x200   :  { %474 = vmatmul.mubr.f32.vlgmr.msra.gmra.mrb[2].mxu0 %v237_v61 }
 0x2d3   :  { %v320_v2 = vpop.f32.mrb[2].mxu0 }
 0x2d4   :  { %v475_v3 = vpop.f32.mrb[3].mxu0  ;;  %v327_v4 = vsel %vm326_vm2, %v320_v2, -inf }
 0x2d5   :  { %328 = vmax.xlane.f32.xlu0 %v327_v4 }
 0x362   :  { %v329_v0 = vpop.xlane.xlu0 %328 }
 0x363   :  { %v330_v5 = vsub.f32 %v327_v4, %v329_v0 }
 0x365   :  { %v331_v6 = vmul.f32 1.442695, %v330_v5 }
 0x367   :  { %540 = vpow2.f32 %v331_v6 }
 0x371   :  { %v541_v7 = vpop.eup %540 }
 0x372   :  { %333 = vadd.xlane.f32.xlu0 %v541_v7 }
 0x3ff   :  { %v334_v8 = vpop.xlane.xlu0 %333 }
 0x400   :  { %542 = vrcp.f32 %v334_v8 }
 0x40a   :  { %v543_v9 = vpop.eup %542 }
 0x40b   :  { %v336_v10 = vmul.f32 %v543_v9, %v541_v7 }
 0x40d   :  { %337 = vst [vmem:[#allocation10] sm:$0xff] %v336_v10 }
 0x40e   :  { %643 = shalt.err (!%p640_p8)
}
 0x40f   :  { %s644_s1 = scalar_lea.hbm %s791_s4, 128 }
 0x410   :  { %p645_p9 = scmp.ne.s32.totalorder %s791_s4, %s644_s1  ;;  %p648_p10 = scmp.lt.u32.totalorder %s644_s1, %s791_s4 }
 0x412   :  { %p650_p11 = pnand %p648_p10, %p645_p9 }
 0x414   :  { %653 = shalt.err (!%p650_p11)
}
 0x415   :  { %347 = dma.vmem_to_hbm [thread:$0]  %s345_s25, 128, %s791_s4, [#allocation4]  }
 0x416   :  { %660 = dma.done.wait [#allocation4], 128  }
 0x417   :  { %661 = vsyncadd [#allocation4], 4294967168 }
 0x418   :  { %351 = vsyncpa [#allocation3], 1 }
 0x419   :  { %352 = vsyncpa [#allocation6], 1 }
 0x41a   :  { %353 = vsyncpa [#allocation9], 1 }
 0x41b   :  { %354 = vsyncpa [#allocation4], 1 }

</bundles_post_ra>
